<compile_context>
chip_gen: v7x
topology: tpu7x:2x2x1
jax: 0.10.0
libtpu: 0.0.40
codegen_flags: <defaults>
</compile_context>

<pallas_src>
import functools

import jax
import jax.numpy as jnp
from jax.experimental import pallas as pl
from jax.experimental.pallas import tpu as pltpu


_LANES = 128
_TARGET_BLOCK_ELEMS = 1 << 18   # 256K elems -> ~1 MiB f32 per stream per block


def _cdiv(a, b):
    return -(-a // b)


def _depth_loss_sums_kernel(ids_ref, gt_ref, conf_ref, pred_ref, out_ref,
                            acc_num, acc_den, acc_cnt, acc_err, *,
                            conf_thr, max_depth, normalize_by_depth, total_rows):
    """One grid step over a (block_rows, lane_w) pixel tile.

    ids_ref/gt_ref/conf_ref/pred_ref : (block_rows, lane_w) VMEM tiles
    out_ref : (4,) f32 SMEM  [weighted_err_sum, conf_sum, num_valid, abs_err_sum]
    acc_*   : (acc_rows, lane_w) f32 VMEM accumulators (persist across the grid)
    """
    step = pl.program_id(0)
    block_rows, lane_w = ids_ref.shape
    acc_rows = acc_num.shape[0]
    n_groups = block_rows // acc_rows

    @pl.when(step == 0)
    def _init():
        acc_num[...] = jnp.zeros_like(acc_num)
        acc_den[...] = jnp.zeros_like(acc_den)
        acc_cnt[...] = jnp.zeros_like(acc_cnt)
        acc_err[...] = jnp.zeros_like(acc_err)

    base_row = step * block_rows
    row0 = jax.lax.broadcasted_iota(jnp.int32, (acc_rows, lane_w), 0)

    part_num = jnp.zeros((acc_rows, lane_w), jnp.float32)
    part_den = jnp.zeros((acc_rows, lane_w), jnp.float32)
    part_cnt = jnp.zeros((acc_rows, lane_w), jnp.float32)
    part_err = jnp.zeros((acc_rows, lane_w), jnp.float32)

    # Static, vreg-aligned slab loop: small live set, pure VALU, no XLU,
    # accumulator refs are only touched once per grid step (below).
    for g in range(n_groups):
        r0, r1 = g * acc_rows, (g + 1) * acc_rows
        ids = ids_ref[r0:r1, :]
        gt = gt_ref[r0:r1, :].astype(jnp.float32)
        conf = conf_ref[r0:r1, :].astype(jnp.float32)
        pred = pred_ref[r0:r1, :].astype(jnp.float32)

        # Mask rows of the ragged last tile; OOB VMEM is stale (maybe NaN/Inf),
        # so masking is done with selects, never with multiplies.
        in_bounds = (row0 + (base_row + r0)) < total_rows

        valid = ((conf > conf_thr) & (gt > 0.0) & (gt < max_depth)
                 & (ids >= 0) & in_bounds)

        err = jnp.abs(pred - gt)                      # L1 error
        if normalize_by_depth:
            err_w = err / jnp.maximum(gt, 1e-6)       # exact div (mem-bound; free)
        else:
            err_w = err

        part_num = part_num + jnp.where(valid, conf * err_w, 0.0)
        part_den = part_den + jnp.where(valid, conf, 0.0)
        part_cnt = part_cnt + valid.astype(jnp.float32)
        part_err = part_err + jnp.where(valid, err, 0.0)

    acc_num[...] += part_num
    acc_den[...] += part_den
    acc_cnt[...] += part_cnt
    acc_err[...] += part_err

    @pl.when(step == pl.num_programs(0) - 1)
    def _finalize():
        out_ref[0] = jnp.sum(acc_num[...])   # confidence-weighted loss numerator
        out_ref[1] = jnp.sum(acc_den[...])   # sum of filtered confidence
        out_ref[2] = jnp.sum(acc_cnt[...])   # num_valid
        out_ref[3] = jnp.sum(acc_err[...])   # sum |pred - gt| over valid pixels


def _choose_block_rows(total_rows, lane_w, target_elems):
    """Largest row-block (multiple of 8, <= total_rows) near target_elems."""
    if total_rows < 8:
        return total_rows                     # full leading dim (always legal)
    tgt = max(8, (target_elems // lane_w) // 8 * 8)
    return max(8, min(tgt, (total_rows // 8) * 8))


def _run_sums(ids2d, gt2d, conf2d, pred2d, total_rows, *, conf_thr, max_depth,
              normalize_by_depth, block_elems):
    lane_w = ids2d.shape[1]
    block_rows = _choose_block_rows(total_rows, lane_w, block_elems)
    grid = _cdiv(total_rows, block_rows)
    acc_rows = 8 if block_rows % 8 == 0 else block_rows

    kernel = functools.partial(
        _depth_loss_sums_kernel,
        conf_thr=float(conf_thr),
        max_depth=float(max_depth),
        normalize_by_depth=bool(normalize_by_depth),
        total_rows=int(total_rows),
    )

    in_specs = [pl.BlockSpec((block_rows, lane_w), lambda i: (i, 0))
                for _ in range(4)]
    scratch = [pltpu.VMEM((acc_rows, lane_w), jnp.float32) for _ in range(4)]

    bytes_in = sum(int(x.size) * x.dtype.itemsize
                   for x in (ids2d, gt2d, conf2d, pred2d))
    cost = pl.CostEstimate(flops=12 * int(ids2d.size), transcendentals=0,
                           bytes_accessed=bytes_in + 16)

    return pl.pallas_call(
        kernel,
        out_shape=jax.ShapeDtypeStruct((4,), jnp.float32),
        grid_spec=pltpu.PrefetchScalarGridSpec(
            num_scalar_prefetch=0,
            grid=(grid,),
            in_specs=in_specs,
            out_specs=pl.BlockSpec(memory_space=pltpu.MemorySpace.SMEM),
            scratch_shapes=scratch,
        ),
        compiler_params=pltpu.CompilerParams(
            dimension_semantics=("arbitrary",)),   # reduction axis carries acc
        cost_estimate=cost,
    )(ids2d, gt2d, conf2d, pred2d)


@functools.partial(
    jax.jit,
    static_argnames=("loss_type", "confidence_threshold", "max_depth",
                     "normalize_by_depth", "block_elems"))
def depth_reprojection_loss(splat_depths, id_buffer, gt_depth, confidence, *,
                            loss_type="l1", confidence_threshold=0.1,
                            max_depth=100.0, normalize_by_depth=True,
                            block_elems=_TARGET_BLOCK_ELEMS):
    """JAX/Pallas equivalent of DepthReprojectionLoss.forward.

    Returns (loss: f32 scalar, info: dict of f32 scalars).
    """
    assert loss_type == "l1"  # TODO(synk): 'l2'/'huber' need compute_depth_loss source
    h, w = id_buffer.shape
    hw = h * w
    n = splat_depths.shape[0]

    ids = id_buffer.astype(jnp.int32)
    # Per-pixel gather splat_depths[id_buffer] via XLA's native TPU gather.
    # Indices are clamped; invalid pixels (id < 0, bad depth, low confidence)
    # are rejected by the mask inside the kernel.  Note: ids >= N would raise
    # in the PyTorch reference; here they read splat_depths[N-1].
    pred = jnp.take(splat_depths, jnp.clip(ids, 0, n - 1), axis=0)

    if w % _LANES == 0:
        # Fast path: stream the rasters in their native (H, W) layout -- no
        # wrapper pad copies, every vreg lane populated; ragged last row-block
        # masked in-kernel.
        ids2d, gt2d, conf2d, pred2d = ids, gt_depth, confidence, pred
        total_rows = h
    else:
        # Fallback (W not a lane multiple): flatten + pad to a lane multiple
        # with values rejected by the validity mask (id=-1, gt=0, conf=0).
        rows = _cdiv(hw, _LANES)
        pad = rows * _LANES - hw
        ids2d = jnp.pad(ids.reshape(hw), (0, pad),
                        constant_values=-1).reshape(rows, _LANES)
        gt2d = jnp.pad(gt_depth.reshape(hw), (0, pad)).reshape(rows, _LANES)
        conf2d = jnp.pad(confidence.reshape(hw), (0, pad)).reshape(rows, _LANES)
        pred2d = jnp.pad(pred.reshape(hw), (0, pad)).reshape(rows, _LANES)
        total_rows = rows

    sums = _run_sums(ids2d, gt2d, conf2d, pred2d, total_rows,
                     conf_thr=confidence_threshold, max_depth=max_depth,
                     normalize_by_depth=normalize_by_depth,
                     block_elems=block_elems)

    loss_num, loss_den = sums[0], sums[1]
    num_valid, sum_abs_err = sums[2], sums[3]

    any_valid = num_valid > 0.0
    eps = jnp.float32(1e-8)

    # "if not valid_mask.any(): return 0.0" handled via where().
    loss = jnp.where(any_valid, loss_num / jnp.maximum(loss_den, eps), 0.0)
    mean_confidence = jnp.where(any_valid,
                                loss_den / jnp.maximum(num_valid, 1.0), 0.0)
    mean_depth_error = jnp.where(any_valid,
                                 sum_abs_err / jnp.maximum(num_valid, 1.0), 0.0)

    info = {
        "num_valid": num_valid,
        "mean_confidence": mean_confidence,
        "mean_depth_error": mean_depth_error,
    }
    return loss, info


def _reference_forward(splat_depths, id_buffer, gt_depth, confidence, *,
                       confidence_threshold, max_depth, normalize_by_depth):
    """Plain-JAX reference of the same forward semantics (for self-check)."""
    n = splat_depths.shape[0]
    valid = ((confidence > confidence_threshold) & (gt_depth > 0)
             & (gt_depth < max_depth) & (id_buffer >= 0))
    validf = valid.astype(jnp.float32)
    fconf = confidence * validf
    pred = jnp.take(splat_depths, jnp.clip(id_buffer, 0, n - 1), axis=0)
    err = jnp.abs(pred - gt_depth)
    err_w = err / jnp.maximum(gt_depth, 1e-6) if normalize_by_depth else err
    num_valid = validf.sum()
    loss = jnp.where(num_valid > 0,
                     (fconf * err_w).sum() / jnp.maximum(fconf.sum(), 1e-8), 0.0)
    mean_conf = jnp.where(num_valid > 0,
                          fconf.sum() / jnp.maximum(num_valid, 1.0), 0.0)
    mean_err = jnp.where(num_valid > 0,
                         (validf * err).sum() / jnp.maximum(num_valid, 1.0), 0.0)
    return loss, num_valid, mean_conf, mean_err


def _close(a, b, rtol=5e-3, atol=1e-6):
    a = float(a)
    b = float(b)
    return abs(a - b) <= atol + rtol * abs(b)


if __name__ == "__main__":
    key = jax.random.PRNGKey(0)
    N = 64  # number of splats

    def run_case(h, w, block_elems):
        ck = jax.random.fold_in(key, h * 4096 + w)
        k1, k2, k3, k4 = jax.random.split(ck, 4)
        splat_depths = jax.random.uniform(k1, (N,), jnp.float32, 1.0, 50.0)
        id_buffer = jax.random.randint(k2, (h, w), -1, N, dtype=jnp.int32)
        gt_depth = jax.random.uniform(k3, (h, w), jnp.float32, -5.0, 120.0)
        confidence = jax.random.uniform(k4, (h, w), jnp.float32, 0.0, 1.0)

        loss, info = depth_reprojection_loss(
            splat_depths, id_buffer, gt_depth, confidence,
            loss_type="l1", confidence_threshold=0.1, max_depth=100.0,
            normalize_by_depth=True, block_elems=block_elems)
        loss = jax.block_until_ready(loss)
        info = jax.tree.map(jax.block_until_ready, info)

        ref_loss, ref_nv, ref_mc, ref_me = _reference_forward(
            splat_depths, id_buffer, gt_depth, confidence,
            confidence_threshold=0.1, max_depth=100.0, normalize_by_depth=True)
        assert _close(loss, ref_loss), (float(loss), float(ref_loss))
        assert _close(info["num_valid"], ref_nv)
        assert _close(info["mean_confidence"], ref_mc)
        assert _close(info["mean_depth_error"], ref_me)

    # Direct lane-dense path (W % 128 == 0); small blocks force a multi-step
    # grid with a ragged, in-kernel-masked last row-block.
    run_case(20, 256, block_elems=2048)

    # Fallback path (W % 128 != 0): flatten + pad to a lane multiple.
    run_case(16, 16, block_elems=_TARGET_BLOCK_ELEMS)

    # All-invalid input must hit the "not valid_mask.any()" branch (loss == 0).
    z = jnp.zeros((16, 16), jnp.float32)
    loss0, info0 = depth_reprojection_loss(
        jnp.ones((N,), jnp.float32), jnp.full((16, 16), -1, jnp.int32), z, z,
        loss_type="l1", confidence_threshold=0.1, max_depth=100.0,
        normalize_by_depth=True, block_elems=_TARGET_BLOCK_ELEMS)
    loss0 = jax.block_until_ready(loss0)
    assert float(loss0) == 0.0
    assert float(info0["num_valid"]) == 0.0

    print("KERNEL_OK")
</pallas_src>

<mosaic_0001>
module attributes {stable_mosaic.version = 11 : i64} {
  func.func @_depth_loss_sums_kernel(%arg0: i32, %arg1: memref<8x256xi32, #tpu.memory_space<vmem>>, %arg2: memref<8x256xf32, #tpu.memory_space<vmem>>, %arg3: memref<8x256xf32, #tpu.memory_space<vmem>>, %arg4: memref<8x256xf32, #tpu.memory_space<vmem>>, %arg5: memref<4xf32, #tpu.memory_space<smem>>, %arg6: memref<8x256xf32, #tpu.memory_space<vmem>>, %arg7: memref<8x256xf32, #tpu.memory_space<vmem>>, %arg8: memref<8x256xf32, #tpu.memory_space<vmem>>, %arg9: memref<8x256xf32, #tpu.memory_space<vmem>>) attributes {dimension_semantics = [#tpu.dimension_semantics<arbitrary>], iteration_bounds = array<i64: 3>, scalar_prefetch = 0 : i64, scratch_operands = 4 : i64, tpu.core_type = #tpu.core_type<tc>, window_params = [{transform_indices = @transform_0, window_bounds = array<i64: 8, 256>}, {transform_indices = @transform_1, window_bounds = array<i64: 8, 256>}, {transform_indices = @transform_2, window_bounds = array<i64: 8, 256>}, {transform_indices = @transform_3, window_bounds = array<i64: 8, 256>}, {transform_indices = @transform_4, window_bounds = array<i64: 4>}]} {
    %c0_i32 = arith.constant 0 : i32
    %0 = arith.cmpi eq, %arg0, %c0_i32 : i32
    %1 = arith.extui %0 : i1 to i32
    %c0_i32_0 = arith.constant 0 : i32
    %2 = arith.cmpi ne, %1, %c0_i32_0 : i32
    scf.if %2 {
      %cst_37 = arith.constant 0.000000e+00 : f32
      %63 = vector.broadcast %cst_37 : f32 to vector<8x256xf32>
      %c0_38 = arith.constant 0 : index
      %c0_39 = arith.constant 0 : index
      %64 = vector.load %arg6[%c0_38, %c0_39] : memref<8x256xf32, #tpu.memory_space<vmem>>, vector<8x256xf32>
      tpu.vector_store %arg6[%c0_38, %c0_39], %63 {strides = array<i32>} : memref<8x256xf32, #tpu.memory_space<vmem>>, vector<8x256xf32>,
      %cst_40 = arith.constant 0.000000e+00 : f32
      %65 = vector.broadcast %cst_40 : f32 to vector<8x256xf32>
      %c0_41 = arith.constant 0 : index
      %c0_42 = arith.constant 0 : index
      %66 = vector.load %arg7[%c0_41, %c0_42] : memref<8x256xf32, #tpu.memory_space<vmem>>, vector<8x256xf32>
      tpu.vector_store %arg7[%c0_41, %c0_42], %65 {strides = array<i32>} : memref<8x256xf32, #tpu.memory_space<vmem>>, vector<8x256xf32>,
      %cst_43 = arith.constant 0.000000e+00 : f32
      %67 = vector.broadcast %cst_43 : f32 to vector<8x256xf32>
      %c0_44 = arith.constant 0 : index
      %c0_45 = arith.constant 0 : index
      %68 = vector.load %arg8[%c0_44, %c0_45] : memref<8x256xf32, #tpu.memory_space<vmem>>, vector<8x256xf32>
      tpu.vector_store %arg8[%c0_44, %c0_45], %67 {strides = array<i32>} : memref<8x256xf32, #tpu.memory_space<vmem>>, vector<8x256xf32>,
      %cst_46 = arith.constant 0.000000e+00 : f32
      %69 = vector.broadcast %cst_46 : f32 to vector<8x256xf32>
      %c0_47 = arith.constant 0 : index
      %c0_48 = arith.constant 0 : index
      %70 = vector.load %arg9[%c0_47, %c0_48] : memref<8x256xf32, #tpu.memory_space<vmem>>, vector<8x256xf32>
      tpu.vector_store %arg9[%c0_47, %c0_48], %69 {strides = array<i32>} : memref<8x256xf32, #tpu.memory_space<vmem>>, vector<8x256xf32>,
    } else {
    }
    %c8_i32 = arith.constant 8 : i32
    %3 = arith.muli %arg0, %c8_i32 : i32
    %4 = tpu.iota {dimensions = array<i32: 0>} : vector<8x256xi32>
    %cst = arith.constant 0.000000e+00 : f32
    %5 = vector.broadcast %cst : f32 to vector<8x256xf32>
    %cst_1 = arith.constant 0.000000e+00 : f32
    %6 = vector.broadcast %cst_1 : f32 to vector<8x256xf32>
    %cst_2 = arith.constant 0.000000e+00 : f32
    %7 = vector.broadcast %cst_2 : f32 to vector<8x256xf32>
    %cst_3 = arith.constant 0.000000e+00 : f32
    %8 = vector.broadcast %cst_3 : f32 to vector<8x256xf32>
    %c0 = arith.constant 0 : index
    %c0_4 = arith.constant 0 : index
    %9 = vector.load %arg1[%c0, %c0_4] : memref<8x256xi32, #tpu.memory_space<vmem>>, vector<8x256xi32>
    %c0_5 = arith.constant 0 : index
    %c0_6 = arith.constant 0 : index
    %10 = vector.load %arg2[%c0_5, %c0_6] : memref<8x256xf32, #tpu.memory_space<vmem>>, vector<8x256xf32>
    %c0_7 = arith.constant 0 : index
    %c0_8 = arith.constant 0 : index
    %11 = vector.load %arg3[%c0_7, %c0_8] : memref<8x256xf32, #tpu.memory_space<vmem>>, vector<8x256xf32>
    %c0_9 = arith.constant 0 : index
    %c0_10 = arith.constant 0 : index
    %12 = vector.load %arg4[%c0_9, %c0_10] : memref<8x256xf32, #tpu.memory_space<vmem>>, vector<8x256xf32>
    %c0_i32_11 = arith.constant 0 : i32
    %13 = arith.addi %3, %c0_i32_11 : i32
    %14 = vector.broadcast %13 : i32 to vector<8x256xi32>
    %15 = arith.addi %4, %14 : vector<8x256xi32>
    %c20_i32 = arith.constant 20 : i32
    %16 = vector.broadcast %c20_i32 : i32 to vector<8x256xi32>
    %17 = arith.cmpi slt, %15, %16 : vector<8x256xi32>
    %cst_12 = arith.constant 1.000000e-01 : f32
    %18 = vector.broadcast %cst_12 : f32 to vector<8x256xf32>
    %19 = arith.cmpf ogt, %11, %18 : vector<8x256xf32>
    %cst_13 = arith.constant 0.000000e+00 : f32
    %20 = vector.broadcast %cst_13 : f32 to vector<8x256xf32>
    %21 = arith.cmpf ogt, %10, %20 : vector<8x256xf32>
    %22 = arith.andi %19, %21 : vector<8x256xi1>
    %cst_14 = arith.constant 1.000000e+02 : f32
    %23 = vector.broadcast %cst_14 : f32 to vector<8x256xf32>
    %24 = arith.cmpf olt, %10, %23 : vector<8x256xf32>
    %25 = arith.andi %22, %24 : vector<8x256xi1>
    %c0_i32_15 = arith.constant 0 : i32
    %26 = vector.broadcast %c0_i32_15 : i32 to vector<8x256xi32>
    %27 = arith.cmpi sge, %9, %26 : vector<8x256xi32>
    %28 = arith.andi %25, %27 : vector<8x256xi1>
    %29 = arith.andi %28, %17 : vector<8x256xi1>
    %30 = arith.subf %12, %10 : vector<8x256xf32>
    %31 = math.absf %30 : vector<8x256xf32>
    %cst_16 = arith.constant 9.99999997E-7 : f32
    %32 = vector.broadcast %cst_16 : f32 to vector<8x256xf32>
    %33 = arith.maximumf %10, %32 : vector<8x256xf32>
    %34 = arith.divf %31, %33 : vector<8x256xf32>
    %35 = arith.mulf %11, %34 : vector<8x256xf32>
    %cst_17 = arith.constant 0.000000e+00 : f32
    %36 = vector.broadcast %cst_17 : f32 to vector<8x256xf32>
    %37 = arith.select %29, %35, %36 : vector<8x256xi1>, vector<8x256xf32>
    %38 = arith.addf %5, %37 : vector<8x256xf32>
    %cst_18 = arith.constant 0.000000e+00 : f32
    %39 = vector.broadcast %cst_18 : f32 to vector<8x256xf32>
    %40 = arith.select %29, %11, %39 : vector<8x256xi1>, vector<8x256xf32>
    %41 = arith.addf %6, %40 : vector<8x256xf32>
    %42 = arith.extui %29 : vector<8x256xi1> to vector<8x256xi32>
    %43 = arith.sitofp %42 : vector<8x256xi32> to vector<8x256xf32>
    %44 = arith.addf %7, %43 : vector<8x256xf32>
    %cst_19 = arith.constant 0.000000e+00 : f32
    %45 = vector.broadcast %cst_19 : f32 to vector<8x256xf32>
    %46 = arith.select %29, %31, %45 : vector<8x256xi1>, vector<8x256xf32>
    %47 = arith.addf %8, %46 : vector<8x256xf32>
    %c0_20 = arith.constant 0 : index
    %c0_21 = arith.constant 0 : index
    %48 = vector.load %arg6[%c0_20, %c0_21] : memref<8x256xf32, #tpu.memory_space<vmem>>, vector<8x256xf32>
    %49 = arith.addf %48, %38 : vector<8x256xf32>
    %c0_22 = arith.constant 0 : index
    %c0_23 = arith.constant 0 : index
    %50 = vector.load %arg6[%c0_22, %c0_23] : memref<8x256xf32, #tpu.memory_space<vmem>>, vector<8x256xf32>
    tpu.vector_store %arg6[%c0_22, %c0_23], %49 {strides = array<i32>} : memref<8x256xf32, #tpu.memory_space<vmem>>, vector<8x256xf32>,
    %c0_24 = arith.constant 0 : index
    %c0_25 = arith.constant 0 : index
    %51 = vector.load %arg7[%c0_24, %c0_25] : memref<8x256xf32, #tpu.memory_space<vmem>>, vector<8x256xf32>
    %52 = arith.addf %51, %41 : vector<8x256xf32>
    %c0_26 = arith.constant 0 : index
    %c0_27 = arith.constant 0 : index
    %53 = vector.load %arg7[%c0_26, %c0_27] : memref<8x256xf32, #tpu.memory_space<vmem>>, vector<8x256xf32>
    tpu.vector_store %arg7[%c0_26, %c0_27], %52 {strides = array<i32>} : memref<8x256xf32, #tpu.memory_space<vmem>>, vector<8x256xf32>,
    %c0_28 = arith.constant 0 : index
    %c0_29 = arith.constant 0 : index
    %54 = vector.load %arg8[%c0_28, %c0_29] : memref<8x256xf32, #tpu.memory_space<vmem>>, vector<8x256xf32>
    %55 = arith.addf %54, %44 : vector<8x256xf32>
    %c0_30 = arith.constant 0 : index
    %c0_31 = arith.constant 0 : index
    %56 = vector.load %arg8[%c0_30, %c0_31] : memref<8x256xf32, #tpu.memory_space<vmem>>, vector<8x256xf32>
    tpu.vector_store %arg8[%c0_30, %c0_31], %55 {strides = array<i32>} : memref<8x256xf32, #tpu.memory_space<vmem>>, vector<8x256xf32>,
    %c0_32 = arith.constant 0 : index
    %c0_33 = arith.constant 0 : index
    %57 = vector.load %arg9[%c0_32, %c0_33] : memref<8x256xf32, #tpu.memory_space<vmem>>, vector<8x256xf32>
    %58 = arith.addf %57, %47 : vector<8x256xf32>
    %c0_34 = arith.constant 0 : index
    %c0_35 = arith.constant 0 : index
    %59 = vector.load %arg9[%c0_34, %c0_35] : memref<8x256xf32, #tpu.memory_space<vmem>>, vector<8x256xf32>
    tpu.vector_store %arg9[%c0_34, %c0_35], %58 {strides = array<i32>} : memref<8x256xf32, #tpu.memory_space<vmem>>, vector<8x256xf32>,
    %c2_i32 = arith.constant 2 : i32
    %60 = arith.cmpi eq, %arg0, %c2_i32 : i32
    %61 = arith.extui %60 : i1 to i32
    %c0_i32_36 = arith.constant 0 : i32
    %62 = arith.cmpi ne, %61, %c0_i32_36 : i32
    scf.if %62 {
      %c0_37 = arith.constant 0 : index
      %c0_38 = arith.constant 0 : index
      %63 = vector.load %arg6[%c0_37, %c0_38] : memref<8x256xf32, #tpu.memory_space<vmem>>, vector<8x256xf32>
      %64 = vector.shape_cast %63 : vector<8x256xf32> to vector<1x8x256xf32>
      %cst_39 = arith.constant dense<0.000000e+00> : vector<1xf32>
      %65 = vector.multi_reduction <add>, %64, %cst_39 [1, 2] : vector<1x8x256xf32> to vector<1xf32>
      %66 = vector.shape_cast %65 : vector<1xf32> to vector<1x1x1xf32>
      %67 = vector.extract %66[0, 0, 0] : f32 from vector<1x1x1xf32>
      %c0_40 = arith.constant 0 : index
      %68 = memref.load %arg5[%c0_40] : memref<4xf32, #tpu.memory_space<smem>>
      memref.store %67, %arg5[%c0_40] : memref<4xf32, #tpu.memory_space<smem>>
      %c0_41 = arith.constant 0 : index
      %c0_42 = arith.constant 0 : index
      %69 = vector.load %arg7[%c0_41, %c0_42] : memref<8x256xf32, #tpu.memory_space<vmem>>, vector<8x256xf32>
      %70 = vector.shape_cast %69 : vector<8x256xf32> to vector<1x8x256xf32>
      %cst_43 = arith.constant dense<0.000000e+00> : vector<1xf32>
      %71 = vector.multi_reduction <add>, %70, %cst_43 [1, 2] : vector<1x8x256xf32> to vector<1xf32>
      %72 = vector.shape_cast %71 : vector<1xf32> to vector<1x1x1xf32>
      %73 = vector.extract %72[0, 0, 0] : f32 from vector<1x1x1xf32>
      %c1 = arith.constant 1 : index
      %74 = memref.load %arg5[%c1] : memref<4xf32, #tpu.memory_space<smem>>
      memref.store %73, %arg5[%c1] : memref<4xf32, #tpu.memory_space<smem>>
      %c0_44 = arith.constant 0 : index
      %c0_45 = arith.constant 0 : index
      %75 = vector.load %arg8[%c0_44, %c0_45] : memref<8x256xf32, #tpu.memory_space<vmem>>, vector<8x256xf32>
      %76 = vector.shape_cast %75 : vector<8x256xf32> to vector<1x8x256xf32>
      %cst_46 = arith.constant dense<0.000000e+00> : vector<1xf32>
      %77 = vector.multi_reduction <add>, %76, %cst_46 [1, 2] : vector<1x8x256xf32> to vector<1xf32>
      %78 = vector.shape_cast %77 : vector<1xf32> to vector<1x1x1xf32>
      %79 = vector.extract %78[0, 0, 0] : f32 from vector<1x1x1xf32>
      %c2 = arith.constant 2 : index
      %80 = memref.load %arg5[%c2] : memref<4xf32, #tpu.memory_space<smem>>
      memref.store %79, %arg5[%c2] : memref<4xf32, #tpu.memory_space<smem>>
      %c0_47 = arith.constant 0 : index
      %c0_48 = arith.constant 0 : index
      %81 = vector.load %arg9[%c0_47, %c0_48] : memref<8x256xf32, #tpu.memory_space<vmem>>, vector<8x256xf32>
      %82 = vector.shape_cast %81 : vector<8x256xf32> to vector<1x8x256xf32>
      %cst_49 = arith.constant dense<0.000000e+00> : vector<1xf32>
      %83 = vector.multi_reduction <add>, %82, %cst_49 [1, 2] : vector<1x8x256xf32> to vector<1xf32>
      %84 = vector.shape_cast %83 : vector<1xf32> to vector<1x1x1xf32>
      %85 = vector.extract %84[0, 0, 0] : f32 from vector<1x1x1xf32>
      %c3 = arith.constant 3 : index
      %86 = memref.load %arg5[%c3] : memref<4xf32, #tpu.memory_space<smem>>
      memref.store %85, %arg5[%c3] : memref<4xf32, #tpu.memory_space<smem>>
    } else {
    }
    return
  }
  func.func @transform_0(%arg0: i32) -> (i32, i32) {
    %c0_i32 = arith.constant 0 : i32
    %c0_i32_0 = arith.constant 0 : i32
    return %arg0, %c0_i32 : i32, i32
  }
  func.func @transform_1(%arg0: i32) -> (i32, i32) {
    %c0_i32 = arith.constant 0 : i32
    %c0_i32_0 = arith.constant 0 : i32
    return %arg0, %c0_i32 : i32, i32
  }
  func.func @transform_2(%arg0: i32) -> (i32, i32) {
    %c0_i32 = arith.constant 0 : i32
    %c0_i32_0 = arith.constant 0 : i32
    return %arg0, %c0_i32 : i32, i32
  }
  func.func @transform_3(%arg0: i32) -> (i32, i32) {
    %c0_i32 = arith.constant 0 : i32
    %c0_i32_0 = arith.constant 0 : i32
    return %arg0, %c0_i32 : i32, i32
  }
  func.func @transform_4(%arg0: i32) -> i32 {
    %c0_i32 = arith.constant 0 : i32
    %c0_i32_0 = arith.constant 0 : i32
    return %c0_i32 : i32
  }
}

</mosaic_0001>

<bundles_post_ra>
// kernel: depth_reprojection_loss.1
= control target key start
LH: loop header
LB: loop body
LE: loop exit
PB: predicated region body
PF: predicated region fallthrough
CT: control target
= control target key end

     0   :  { %9 = vsyncpa [#allocation7], 0  ;;  %s591_s15 = smov 0   ;;  %s675_s0 = inlined_call_operand.vmem [shape: s32[20,256], index: 0, kind: input, shape index: {}]   ;;  %s676_s1 = inlined_call_operand.vmem [shape: f32[20,256], index: 1, kind: input, shape index: {}]   ;;  %s677_s2 = inlined_call_operand.vmem [shape: f32[20,256], index: 2, kind: input, shape index: {}]   ;;  %s678_s3 = inlined_call_operand.vmem [shape: f32[20,256], index: 3, kind: input, shape index: {}]   ;;  %s679_s4 = inlined_call_operand.vmem [shape: f32[4], index: 4, kind: output, shape index: {}]  }
   0x1 LB: > { %s597_s16 = sadd.s32 4294967295, %s561_s15   ;;  %p486_p0 = scmp.ge.s32.totalorder %s561_s15, 1  ;;  %s561_s15 = sphi %s591_s15, %s15_s15  }
   0x2   : > { %p188_p1 = scmp.lt.s32.totalorder %s561_s15, 4 }
   0x4   : > { %p189_p2 = pnand %p486_p0, %p188_p1 }
   0x5   : > { %p224_p3 = scmp.lt.s32.totalorder (!%p189_p2), %s597_s16, 2  ;;  %p495_p4 = scmp.ne.s32.totalorder (!%p189_p2), %s597_s16, 0 }
   0x6   : > { %192 = sbr.rel (%p189_p2) target bundleno = 283 (0x11b), region = 36 }
   0xd   : > { %s225_s17 = scalar_select %p224_p3, %s597_s16, 2 }
   0xe   : > { %247 = sbr.rel (%p495_p4) target bundleno = 21 (0x15), region = 40  ;;  %v563_v0 = vmov (!%p495_p4), 0.0  }
   0xf   : > { %s504_s18 = sshll.u32 %s225_s17, 4  ;;  %248 = vst [vmem:[#allocation2] sm:$0xff] (!%p495_p4), %v563_v0  ;;  %249 = vst [vmem:[#allocation2 + $0x8] sm:$0xff] (!%p495_p4), %v563_v0 }
  0x10   : > { %s606_s21 = scalar_lea.vmem %s675_s0, %s504_s18  ;;  %s611_s24 = scalar_lea.vmem %s676_s1, %s504_s18  ;;  %250 = vst [vmem:[#allocation3] sm:$0xff] (!%p495_p4), %v563_v0  ;;  %251 = vst [vmem:[#allocation3 + $0x8] sm:$0xff] (!%p495_p4), %v563_v0 }
  0x11   : > { %s616_s27 = scalar_lea.vmem %s677_s2, %s504_s18  ;;  %s621_s30 = scalar_lea.vmem %s678_s3, %s504_s18  ;;  %252 = vst [vmem:[#allocation4] sm:$0xff] (!%p495_p4), %v563_v0  ;;  %253 = vst [vmem:[#allocation4 + $0x8] sm:$0xff] (!%p495_p4), %v563_v0 }
  0x12   : > { %254 = vst [vmem:[#allocation5] sm:$0xff] (!%p495_p4), %v563_v0  ;;  %255 = vst [vmem:[#allocation5 + $0x8] sm:$0xff] (!%p495_p4), %v563_v0 }
  0x15 PF: > { %s496_s5 = sshll.u32 %s597_s16, 3  ;;  %v257_v1 = vlaneseq  ;;  %v259_v2 = vld [vmem:[%s606_s21] sm:$0xff]  ;;  %v260_v10 = vld [vmem:[%s606_s21 + $0x8] sm:$0xff]  ;;  %v564_v26 = vmov 0.0   ;;  %p499_p5 = scmp.ne.s32.totalorder %s597_s16, 2 }
  0x16   : > { %v261_v3 = vld [vmem:[%s611_s24] sm:$0xff]  ;;  %v267_v6 = vstv %s496_s5  ;;  %vm280_vm4 = vcmp.ge.s32.totalorder %v259_v2, 0  ;;  %v262_v11 = vld [vmem:[%s611_s24 + $0x8] sm:$0xff]  ;;  %vm281_vm11 = vcmp.ge.s32.totalorder %v260_v10, 0 }
  0x17   : > { %v263_v4 = vld [vmem:[%s616_s27] sm:$0xff]  ;;  %vm272_vm1 = vcmp.gt.f32.partialorder %v261_v3, 0.0  ;;  %vm276_vm2 = vcmp.lt.f32.partialorder %v261_v3, 100.0  ;;  %v258_v7 = vshrl.u32 %v257_v1, 7  ;;  %v290_v9 = vmax.f32 %v261_v3, 1e-06 }
  0x18   : > { %v265_v5 = vld [vmem:[%s621_s30] sm:$0xff]  ;;  %vm270_vm0 = vcmp.gt.f32.partialorder %v263_v4, 0.1  ;;  %v264_v12 = vld [vmem:[%s616_s27 + $0x8] sm:$0xff]  ;;  %vm273_vm6 = vcmp.gt.f32.partialorder %v262_v11, 0.0  ;;  %vm277_vm7 = vcmp.lt.f32.partialorder %v262_v11, 100.0 }
  0x19   : > { %vm274_vm3 = vmand %vm270_vm0, %vm272_vm1  ;;  %v286_v8 = vsub.f32 %v265_v5, %v261_v3  ;;  %v266_v13 = vld [vmem:[%s621_s30 + $0x8] sm:$0xff]  ;;  %v268_v14 = vadd.s32 %v267_v6, %v258_v7  ;;  %533 = vrcp.f32 %v290_v9  ;;  %vm271_vm9 = vcmp.gt.f32.partialorder %v264_v12, 0.1  ;;  %v322_v17 = vld [vmem:[#allocation3] sm:$0xff] }
  0x1a   : > { %vm278_vm5 = vmand %vm274_vm3, %vm276_vm2  ;;  %v287_v15 = vsub.f32 %v266_v13, %v262_v11  ;;  %v291_v16 = vmax.f32 %v262_v11, 1e-06  ;;  %v328_v19 = vld [vmem:[#allocation4] sm:$0xff]  ;;  %v334_v20 = vld [vmem:[#allocation5] sm:$0xff] }
  0x1b   : > { %vm282_vm8 = vmand %vm278_vm5, %vm280_vm4  ;;  %vm269_vm12 = vcmp.lt.s32.totalorder %v268_v14, 20  ;;  %v288_v18 = vand.u32 2147483647, %v286_v8  ;;  %v323_v22 = vld [vmem:[#allocation3 + $0x8] sm:$0xff]  ;;  %v329_v23 = vld [vmem:[#allocation4 + $0x8] sm:$0xff] }
  0x1c   : > { %vm275_vm10 = vmand %vm271_vm9, %vm273_vm6  ;;  %535 = vrcp.f32 %v291_v16  ;;  %v289_v24 = vand.u32 2147483647, %v287_v15  ;;  %v335_v29 = vld [vmem:[#allocation5 + $0x8] sm:$0xff]  ;;  %v316_v44 = vld [vmem:[#allocation2] sm:$0xff] }
  0x1d   : > { %vm279_vm13 = vmand %vm275_vm10, %vm277_vm7  ;;  %v317_v49 = vld [vmem:[#allocation2 + $0x8] sm:$0xff] }
  0x1e   : > { %vm634_vm14 = vmand %vm282_vm8, %vm269_vm12 }
  0x1f   : > { %vm283_vm15 = vmand %vm279_vm13, %vm281_vm11  ;;  %v302_v25 = vsel %vm634_vm14, %v263_v4, 0.0  ;;  %v497_v27 = vsel %vm634_vm14, 1.0, %v564_v26  ;;  %v312_v28 = vsel %vm634_vm14, %v288_v18, 0.0 }
  0x20   : > { %vm645_vm0 = vmand %vm283_vm15, %vm269_vm12  ;;  %v324_v31 = vadd.f32 %v322_v17, %v302_v25  ;;  %v330_v32 = vadd.f32 %v497_v27, %v328_v19  ;;  %v336_v33 = vadd.f32 %v334_v20, %v312_v28 }
  0x21   : > { %v303_v34 = vsel %vm645_vm0, %v264_v12, 0.0  ;;  %v498_v35 = vsel %vm645_vm0, 1.0, %v564_v26  ;;  %v313_v36 = vsel %vm645_vm0, %v289_v24, 0.0 }
  0x22   : > { %326 = vst [vmem:[#allocation3] sm:$0xff] %v324_v31  ;;  %v325_v37 = vadd.f32 %v323_v22, %v303_v34  ;;  %332 = vst [vmem:[#allocation4] sm:$0xff] %v330_v32  ;;  %v331_v38 = vadd.f32 %v498_v35, %v329_v23  ;;  %v337_v39 = vadd.f32 %v335_v29, %v313_v36 }
  0x23   : > { %338 = vst [vmem:[#allocation5] sm:$0xff] %v336_v33  ;;  %v534_v40 = vpop.eup %533 }
  0x24   : > { %327 = vst [vmem:[#allocation3 + $0x8] sm:$0xff] %v325_v37  ;;  %333 = vst [vmem:[#allocation4 + $0x8] sm:$0xff] %v331_v38  ;;  %v293_v41 = vmul.f32 %v534_v40, %v288_v18 }
  0x25   : > { %339 = vst [vmem:[#allocation5 + $0x8] sm:$0xff] %v337_v39 }
  0x26   : > { %v536_v42 = vpop.eup %535  ;;  %v296_v43 = vmul.f32 %v293_v41, %v263_v4 }
  0x27   : > { %v295_v45 = vmul.f32 %v536_v42, %v289_v24 }
  0x28   : > { %v298_v46 = vsel %vm634_vm14, %v296_v43, 0.0  ;;  %343 = sbr.rel (%p499_p5) target bundleno = 267 (0x10b), region = 44 }
  0x29   : > { %v318_v47 = vadd.f32 %v316_v44, %v298_v46  ;;  %v297_v48 = vmul.f32 %v295_v45, %v264_v12  ;;  %v372_v52 = vld [vmem:[#allocation4] sm:$0xff] (!%p499_p5)  ;;  %v358_v60 = vld [vmem:[#allocation3] sm:$0xff] (!%p499_p5) }
  0x2a   : > { %v386_v57 = vld [vmem:[#allocation5] sm:$0xff] (!%p499_p5) }
  0x2b   : > { %320 = vst [vmem:[#allocation2] sm:$0xff] %v318_v47  ;;  %v299_v50 = vsel %vm645_vm0, %v297_v48, 0.0  ;;  %v373_v53 = vld [vmem:[#allocation4 + $0x8] sm:$0xff] (!%p499_p5)  ;;  %v359_v61 = vld [vmem:[#allocation3 + $0x8] sm:$0xff] (!%p499_p5) }
  0x2c   : > { %v319_v51 = vadd.f32 %v317_v49, %v299_v50  ;;  %v374_v55 = vadd.f32 (!%p499_p5), %v373_v53, %v372_v52  ;;  %v387_v58 = vld [vmem:[#allocation5 + $0x8] sm:$0xff] (!%p499_p5)  ;;  %v360_v63 = vadd.f32 (!%p499_p5), %v359_v61, %v358_v60 }
  0x2d   : > { %v388_v62 = vadd.f32 (!%p499_p5), %v387_v58, %v386_v57 }
  0x2e   : > { %321 = vst [vmem:[#allocation2 + $0x8] sm:$0xff] %v319_v51  ;;  %375 = vadd.xlane.f32.xlu1 (!%p499_p5), %v374_v55 }
  0x32   : > { %v344_v54 = vld [vmem:[#allocation2] sm:$0xff]  ;;  %389 = vadd.xlane.f32.xlu1 %v388_v62 }
  0x35   : > { %v345_v56 = vld [vmem:[#allocation2 + $0x8] sm:$0xff] }
  0x36   : > { %v346_v59 = vadd.f32 %v345_v56, %v344_v54 }
  0x38   : > { %347 = vadd.xlane.f32.xlu0 %v346_v59 }
  0x3c   : > { %361 = vadd.xlane.f32.xlu0 %v360_v63 }
  0xbb   : > { %v376_v0 = vpop.xlane.xlu1 %375 }
  0xbc   : > { %v377_v1 = vrot.slane %v376_v0, 4 }
  0xbe   : > { %v378_v4 = vadd.f32 %v377_v1, %v376_v0 }
  0xbf   : > { %v390_v6 = vpop.xlane.xlu1 %389 }
  0xc0   : > { %v379_v7 = vrot.slane %v378_v4, 2  ;;  %v391_v8 = vrot.slane %v390_v6, 4 }
  0xc2   : > { %v392_v12 = vadd.f32 %v391_v8, %v390_v6  ;;  %v380_v16 = vadd.f32 %v379_v7, %v378_v4 }
  0xc4   : > { %v393_v15 = vrot.slane %v392_v12, 2  ;;  %v381_v22 = vrot.slane %v380_v16, 1 }
  0xc5   : > { %v348_v2 = vpop.xlane.xlu0 %347 }
  0xc6   : > { %v349_v3 = vrot.slane %v348_v2, 4  ;;  %v394_v19 = vadd.f32 %v393_v15, %v392_v12  ;;  %v382_v27 = vadd.f32 %v381_v22, %v380_v16 }
  0xc8   : > { %v350_v5 = vadd.f32 %v349_v3, %v348_v2  ;;  %v395_v23 = vrot.slane %v394_v19, 1 }
  0xc9   : > { %v362_v9 = vpop.xlane.xlu0 %361 }
  0xca   : > { %v351_v10 = vrot.slane %v350_v5, 2  ;;  %v363_v11 = vrot.slane %v362_v9, 4  ;;  %v396_v26 = vadd.f32 %v395_v23, %v394_v19 }
  0xcc   : > { %v364_v13 = vadd.f32 %v363_v11, %v362_v9  ;;  %v352_v14 = vadd.f32 %v351_v10, %v350_v5 }
  0xce   : > { %v365_v17 = vrot.slane %v364_v13, 2  ;;  %v353_v18 = vrot.slane %v352_v14, 1 }
  0xd0   : > { %v366_v20 = vadd.f32 %v365_v17, %v364_v13  ;;  %v354_v21 = vadd.f32 %v353_v18, %v352_v14 }
  0xd2   : > { %508 = vpush %v354_v21  ;;  %v367_v24 = vrot.slane %v366_v20, 1 }
  0xd4   : > { %v368_v25 = vadd.f32 %v367_v24, %v366_v20 }
  0xd6   : > { %510 = vpush %v368_v25 }
  0xd7   : > { %512 = vpush %v382_v27 }
  0xd8   : > { %514 = vpush %v396_v26 }
 0x103   : > { %s509_s6 = spop %508 }
 0x104   : > { %357 = sst [smem:[#allocation6]] %s509_s6 }
 0x107   : > { %s511_s7 = spop %510 }
 0x108   : > { %371 = sst [smem:[#allocation6 + $0x1]] %s511_s7  ;;  %s513_s8 = spop %512 }
 0x109   : > { %385 = sst [smem:[#allocation6 + $0x2]] %s513_s8  ;;  %s515_s9 = spop %514 }
 0x10a   : > { %399 = sst [smem:[#allocation6 + $0x3]] %s515_s9 }
 0x10b PF: > { %p520_p6 = scmp.eq.s32.totalorder %s597_s16, 2  ;;  %s407_s12 = sshll.u32 %s679_s4, 4  ;;  %s408_s12 = int_to_ptr.vmem [resolvable:$true] %s407_s12 }
 0x10c   : > { %s537_s13 = scalar_lea.vmem %s408_s12, 16  ;;  %p544_p10 = scmp.lt.s32.totalorder %s408_s12, %s408_s12 }
 0x10d   : > { %p538_p7 = scmp.ne.s32.totalorder %s408_s12, %s537_s13  ;;  %p545_p11 = scmp.lt.s32.totalorder %s537_s13, %s537_s13 }
 0x10f   : > { %p539_p8 = pnand %p538_p7, %p520_p6  ;;  %p546_p12 = por %p545_p11, %p544_p10 }
 0x111   : > { %p540_p9 = pneg %p539_p8 }
 0x113   : > { %p547_p13 = pnand %p546_p12, %p540_p9 }
 0x115   : > { %550 = shalt.err (!%p547_p13)
}
 0x116   : > { %s565_s14 = smov [#allocation6]  }
 0x117   : > { %517 = dma.smem_to_vmem (%p520_p6), %s565_s14, 16, %s408_s12, [#allocation7]  }
 0x118   : > { %556 = dma.done.wait (%p520_p6), [#allocation7], 16  }
 0x119   : > { %558 = vsyncadd (%p520_p6), [#allocation7], 4294967280 }
 0x11a   : > { %415 = sfence }
 0x11b PF: > { %s15_s15 = sadd.s32 1, %s561_s15  }
 0x11c   : > { %p12_p0 = scmp.ge.s32.totalorder %s15_s15, 5  }
 0x11e   :  { %14 = sbr.rel (!%p12_p0) target bundleno = 1 (0x1), region = 84 }
 0x125   :  { %421 = vsyncpa [#allocation7], 1 }
 0x126   :  { %423 = vsyncpa [#allocation7 + $0x1], 1 }

</bundles_post_ra>
